<compile_context>
chip_gen: v7x
topology: tpu7x:2x2x1
jax: 0.10.0
libtpu: 0.0.40
codegen_flags: <defaults>
</compile_context>

<pallas_src>
import functools
import math

import jax
import jax.numpy as jnp
from jax.experimental import pallas as pl
from jax.experimental.pallas import tpu as pltpu


def _solarize_kernel(x_ref, mean_ref, std_ref, inv_std_ref, o_ref, *, threshold: float):
    # x_ref: (TB, L) block of row-flattened image planes (one row per (n, c) plane).
    x = x_ref[...].astype(jnp.float32)   # (TB, L), normalized space
    m = mean_ref[...]                    # (TB, 1) per-plane channel mean
    s = std_ref[...]                     # (TB, 1) per-plane channel std
    inv_s = inv_std_ref[...]             # (TB, 1) precomputed 1/std (no divide in kernel)

    # Fused denormalize -> clamp -> solarize -> renormalize (all VPU elementwise).
    px = jnp.clip(x * s + m, 0.0, 1.0)               # pixel space [0, 1]
    sol = jnp.where(px >= threshold, 1.0 - px, px)   # invert values above threshold
    o_ref[...] = ((sol - m) * inv_s).astype(o_ref.dtype)


def _pick_row_block(rows: int, cols: int, target_elems: int = 512 * 1024) -> int:
    """Largest sublane-aligned row block <= ~target_elems, preferring divisors of rows."""
    if rows <= 8:
        return rows                       # block == full dim, always legal
    max_tb = min(rows, max(8, target_elems // max(cols, 1)))
    max_tb = max(8, (max_tb // 8) * 8)    # sublane (8) alignment
    # Prefer an exact divisor of `rows` to avoid a wrapper-side padding copy.
    for tb in range(max_tb, 7, -8):
        if rows % tb == 0:
            return tb
    return max_tb                         # no aligned divisor: fall back (pad)


def solarize(x, threshold, mean=None, std=None):
    """JAX/Pallas equivalent of F.solarize. x: (N, C, H, W) float."""
    N, C, H, W = x.shape
    R, L = N * C, H * W

    in_dtype = x.dtype if jnp.issubdtype(x.dtype, jnp.floating) else jnp.float32
    x2 = x.astype(in_dtype).reshape(R, L)          # free reshape (contiguous)

    if mean is None:
        mean_c = jnp.zeros((C,), jnp.float32)
    else:
        mean_c = jnp.broadcast_to(jnp.asarray(mean, jnp.float32).reshape(-1), (C,))
    if std is None:
        std_c = jnp.ones((C,), jnp.float32)
    else:
        std_c = jnp.broadcast_to(jnp.asarray(std, jnp.float32).reshape(-1), (C,))
    inv_std_c = 1.0 / std_c

    # One row per (n, c) plane -> per-row scalars for the channel statistics.
    mean_r = jnp.tile(mean_c, N).reshape(R, 1)
    std_r = jnp.tile(std_c, N).reshape(R, 1)
    inv_std_r = jnp.tile(inv_std_c, N).reshape(R, 1)

    # Block sizing: ~2 MiB f32 lane-dense blocks. Double-buffered in + out is
    # ~8 MiB resident -- well under the default scoped VMEM limit on v5e/v6e/v7x.
    tb = _pick_row_block(R, L)
    r_pad = math.ceil(R / tb) * tb
    if r_pad != R:
        pad = r_pad - R
        x2 = jnp.pad(x2, ((0, pad), (0, 0)))
        mean_r = jnp.pad(mean_r, ((0, pad), (0, 0)))
        std_r = jnp.pad(std_r, ((0, pad), (0, 0)), constant_values=1.0)
        inv_std_r = jnp.pad(inv_std_r, ((0, pad), (0, 0)), constant_values=1.0)

    grid = (r_pad // tb,)
    kernel = functools.partial(_solarize_kernel, threshold=float(threshold))

    out = pl.pallas_call(
        kernel,
        out_shape=jax.ShapeDtypeStruct((r_pad, L), in_dtype),
        grid=grid,
        in_specs=[
            pl.BlockSpec((tb, L), lambda i: (i, 0)),   # image rows (lane-dense slab)
            pl.BlockSpec((tb, 1), lambda i: (i, 0)),   # per-row mean
            pl.BlockSpec((tb, 1), lambda i: (i, 0)),   # per-row std
            pl.BlockSpec((tb, 1), lambda i: (i, 0)),   # per-row 1/std
        ],
        out_specs=pl.BlockSpec((tb, L), lambda i: (i, 0)),
        compiler_params=pltpu.CompilerParams(
            dimension_semantics=("parallel",)),
    )(x2, mean_r, std_r, inv_std_r)

    return out[:R].reshape(N, C, H, W)


class Solarize:
    """Mirror of the PyTorch Solarize module (forward only)."""

    def __init__(self, threshold, mean=None, std=None):
        self.threshold = float(threshold)
        self.mean = None if mean is None else jnp.asarray(mean, jnp.float32)
        self.std = None if std is None else jnp.asarray(std, jnp.float32)

    def __call__(self, x):
        return solarize(x, self.threshold, self.mean, self.std)


if __name__ == "__main__":
    key = jax.random.PRNGKey(0)
    N, C, H, W = 2, 4, 16, 16
    # Input is in "normalized" space (the _DenormalizedAttack contract).
    x = jax.random.uniform(key, (N, C, H, W), jnp.float32, minval=-1.0, maxval=1.0)

    attack = Solarize(
        threshold=0.5,
        mean=(0.5, 0.5, 0.5, 0.5),
        std=(0.5, 0.5, 0.5, 0.5),
    )
    y = attack(x)
    jax.block_until_ready(y)

    # Reference check in plain JAX (same fused math).
    mean = jnp.asarray((0.5,) * 4, jnp.float32).reshape(1, C, 1, 1)
    std = jnp.asarray((0.5,) * 4, jnp.float32).reshape(1, C, 1, 1)
    px = jnp.clip(x * std + mean, 0.0, 1.0)
    ref = (jnp.where(px >= 0.5, 1.0 - px, px) - mean) / std

    assert y.shape == (N, C, H, W) and y.dtype == jnp.float32
    assert bool(jnp.all(jnp.isfinite(y)))
    assert bool(jnp.max(jnp.abs(y - ref)) < 1e-5)

    # Also exercise the no-stats path (mean/std = None -> identity affine).
    y2 = Solarize(threshold=0.75)(x)
    jax.block_until_ready(y2)
    px2 = jnp.clip(x, 0.0, 1.0)
    ref2 = jnp.where(px2 >= 0.75, 1.0 - px2, px2)
    assert bool(jnp.max(jnp.abs(y2 - ref2)) < 1e-5)

    print("KERNEL_OK")
</pallas_src>

<mosaic_0001>
module attributes {stable_mosaic.version = 11 : i64} {
  func.func @_solarize_kernel(%arg0: i32, %arg1: memref<8x256xf32, #tpu.memory_space<vmem>>, %arg2: memref<8x1xf32, #tpu.memory_space<vmem>>, %arg3: memref<8x1xf32, #tpu.memory_space<vmem>>, %arg4: memref<8x1xf32, #tpu.memory_space<vmem>>, %arg5: memref<8x256xf32, #tpu.memory_space<vmem>>) attributes {dimension_semantics = [#tpu.dimension_semantics<parallel>], iteration_bounds = array<i64: 1>, scalar_prefetch = 0 : i64, scratch_operands = 0 : i64, tpu.core_type = #tpu.core_type<tc>, window_params = [{transform_indices = @transform_0, window_bounds = array<i64: 8, 256>}, {transform_indices = @transform_1, window_bounds = array<i64: 8, 1>}, {transform_indices = @transform_2, window_bounds = array<i64: 8, 1>}, {transform_indices = @transform_3, window_bounds = array<i64: 8, 1>}, {transform_indices = @transform_4, window_bounds = array<i64: 8, 256>}]} {
    %c0 = arith.constant 0 : index
    %c0_0 = arith.constant 0 : index
    %0 = vector.load %arg1[%c0, %c0_0] : memref<8x256xf32, #tpu.memory_space<vmem>>, vector<8x256xf32>
    %c0_1 = arith.constant 0 : index
    %c0_2 = arith.constant 0 : index
    %1 = vector.load %arg2[%c0_1, %c0_2] : memref<8x1xf32, #tpu.memory_space<vmem>>, vector<8x1xf32>
    %c0_3 = arith.constant 0 : index
    %c0_4 = arith.constant 0 : index
    %2 = vector.load %arg3[%c0_3, %c0_4] : memref<8x1xf32, #tpu.memory_space<vmem>>, vector<8x1xf32>
    %c0_5 = arith.constant 0 : index
    %c0_6 = arith.constant 0 : index
    %3 = vector.load %arg4[%c0_5, %c0_6] : memref<8x1xf32, #tpu.memory_space<vmem>>, vector<8x1xf32>
    %4 = vector.broadcast %2 : vector<8x1xf32> to vector<8x256xf32>
    %5 = arith.mulf %0, %4 : vector<8x256xf32>
    %6 = vector.broadcast %1 : vector<8x1xf32> to vector<8x256xf32>
    %7 = arith.addf %5, %6 : vector<8x256xf32>
    %cst = arith.constant 0.000000e+00 : f32
    %cst_7 = arith.constant 1.000000e+00 : f32
    %8 = vector.broadcast %cst : f32 to vector<8x256xf32>
    %9 = arith.maximumf %8, %7 : vector<8x256xf32>
    %10 = vector.broadcast %cst_7 : f32 to vector<8x256xf32>
    %11 = arith.minimumf %10, %9 : vector<8x256xf32>
    %cst_8 = arith.constant 5.000000e-01 : f32
    %12 = vector.broadcast %cst_8 : f32 to vector<8x256xf32>
    %13 = arith.cmpf oge, %11, %12 : vector<8x256xf32>
    %cst_9 = arith.constant 1.000000e+00 : f32
    %14 = vector.broadcast %cst_9 : f32 to vector<8x256xf32>
    %15 = arith.subf %14, %11 : vector<8x256xf32>
    %16 = arith.select %13, %15, %11 : vector<8x256xi1>, vector<8x256xf32>
    %17 = vector.broadcast %1 : vector<8x1xf32> to vector<8x256xf32>
    %18 = arith.subf %16, %17 : vector<8x256xf32>
    %19 = vector.broadcast %3 : vector<8x1xf32> to vector<8x256xf32>
    %20 = arith.mulf %18, %19 : vector<8x256xf32>
    %c0_10 = arith.constant 0 : index
    %c0_11 = arith.constant 0 : index
    %21 = vector.load %arg5[%c0_10, %c0_11] : memref<8x256xf32, #tpu.memory_space<vmem>>, vector<8x256xf32>
    tpu.vector_store %arg5[%c0_10, %c0_11], %20 {strides = array<i32>} : memref<8x256xf32, #tpu.memory_space<vmem>>, vector<8x256xf32>,
    return
  }
  func.func @transform_0(%arg0: i32) -> (i32, i32) {
    %c0_i32 = arith.constant 0 : i32
    %c0_i32_0 = arith.constant 0 : i32
    return %arg0, %c0_i32 : i32, i32
  }
  func.func @transform_1(%arg0: i32) -> (i32, i32) {
    %c0_i32 = arith.constant 0 : i32
    %c0_i32_0 = arith.constant 0 : i32
    return %arg0, %c0_i32 : i32, i32
  }
  func.func @transform_2(%arg0: i32) -> (i32, i32) {
    %c0_i32 = arith.constant 0 : i32
    %c0_i32_0 = arith.constant 0 : i32
    return %arg0, %c0_i32 : i32, i32
  }
  func.func @transform_3(%arg0: i32) -> (i32, i32) {
    %c0_i32 = arith.constant 0 : i32
    %c0_i32_0 = arith.constant 0 : i32
    return %arg0, %c0_i32 : i32, i32
  }
  func.func @transform_4(%arg0: i32) -> (i32, i32) {
    %c0_i32 = arith.constant 0 : i32
    %c0_i32_0 = arith.constant 0 : i32
    return %arg0, %c0_i32 : i32, i32
  }
}

</mosaic_0001>

<bundles_post_ra>
// kernel: tpu_custom_call.1
= control target key start
LH: loop header
LB: loop body
LE: loop exit
PB: predicated region body
PF: predicated region fallthrough
CT: control target
= control target key end

     0   :  { %v100_v2 = vmov 0   ;;  %s154_s0 = inlined_call_operand.vmem [shape: f32[8,256], index: 0, kind: input, shape index: {}]   ;;  %s155_s1 = inlined_call_operand.vmem [shape: f32[8,1], index: 1, kind: input, shape index: {}]   ;;  %s156_s2 = inlined_call_operand.vmem [shape: f32[8,1], index: 2, kind: input, shape index: {}]   ;;  %s157_s3 = inlined_call_operand.vmem [shape: f32[8,1], index: 3, kind: input, shape index: {}]   ;;  %s158_s4 = inlined_call_operand.hbm [shape: f32[8,256], index: 4, kind: output, shape index: {}]  }
   0x1   :  { %v21_v0 = vld [vmem:[%s156_s2] sm:$0xff]  ;;  %74 = vset.pattern.permute.xlu0 %v100_v2  ;;  %75 = vset.pattern.permute.xlu1 %v100_v2 }
   0x2   :  { %v22_v1 = vld [vmem:[%s157_s3] sm:$0xff] }
   0x3   :  { %9 = vsyncpa [#allocation3], 0  ;;  %25 = vperm.xlu0 %74, %v21_v0   ;;  %51 = vperm.xlu1 %75, %v22_v1   ;;  %v20_v3 = vld [vmem:[%s155_s1] sm:$0xff]  ;;  %v19_v6 = vld [vmem:[%s154_s0 + $0x8] sm:$0xff]  ;;  %s101_s1 = smov [#allocation2]  }
   0x4   :  { %v18_v5 = vld [vmem:[%s154_s0] sm:$0xff]  ;;  %s64_s3 = sshll.u32 %s101_s1, 4  ;;  %s65_s3 = int_to_ptr.vmem [resolvable:$true] %s64_s3 }
   0x5   :  { %s76_s0 = scalar_lea.vmem %s65_s3, 256  ;;  %p81_p1 = scmp.lt.s32.totalorder %s65_s3, %s65_s3 }
   0x6   :  { %p77_p0 = scmp.ne.s32.totalorder %s65_s3, %s76_s0  ;;  %p82_p2 = scmp.lt.s32.totalorder %s76_s0, %s76_s0 }
   0x7   :  { %32 = vperm.xlu0 %74, %v20_v3  }
   0x8   :  { %p83_p3 = por %p82_p2, %p81_p1 }
   0xa   :  { %p84_p4 = pnand %p83_p3, %p77_p0 }
  0x82   :  { %v26_v4 = vpop.permute.xlu0 %25  ;;  %v52_v18 = vpop.permute.xlu1 %51 }
  0x83   :  { %v28_v7 = vmul.f32 %v26_v4, %v18_v5  ;;  %v29_v8 = vmul.f32 %v26_v4, %v19_v6 }
  0x86   :  { %v33_v9 = vpop.permute.xlu0 %32 }
  0x87   :  { %v35_v10 = vadd.f32 %v33_v9, %v28_v7  ;;  %v36_v11 = vadd.f32 %v33_v9, %v29_v8 }
  0x89   :  { %v37_v12 = vmax.f32 %v35_v10, 0.0  ;;  %v38_v13 = vmax.f32 %v36_v11, 0.0 }
  0x8b   :  { %v39_v14 = vmin.f32 %v37_v12, 1.0  ;;  %v40_v15 = vmin.f32 %v38_v13, 1.0 }
  0x8d   :  { %vm41_vm0 = vcmp.ge.f32.partialorder %v39_v14, 0.5  ;;  %vm42_vm1 = vcmp.ge.f32.partialorder %v40_v15, 0.5  ;;  %v43_v16 = vsub.f32 1.0, %v39_v14  ;;  %v44_v17 = vsub.f32 1.0, %v40_v15 }
  0x8f   :  { %v45_v19 = vsel %vm41_vm0, %v43_v16, %v39_v14  ;;  %v46_v20 = vsel %vm42_vm1, %v44_v17, %v40_v15 }
  0x90   :  { %v47_v21 = vsub.f32 %v45_v19, %v33_v9  ;;  %v48_v22 = vsub.f32 %v46_v20, %v33_v9 }
  0x92   :  { %v54_v23 = vmul.f32 %v52_v18, %v47_v21  ;;  %v55_v24 = vmul.f32 %v52_v18, %v48_v22 }
  0x94   :  { %56 = vst [vmem:[#allocation2] sm:$0xff] %v54_v23  ;;  %57 = vst [vmem:[#allocation2 + $0x8] sm:$0xff] %v55_v24 }
  0x95   :  { %87 = shalt.err (!%p84_p4)
}
  0x96   :  { %s88_s26 = scalar_lea.hbm %s158_s4, 256 }
  0x97   :  { %p89_p5 = scmp.ne.s32.totalorder %s158_s4, %s88_s26  ;;  %p92_p6 = scmp.lt.u32.totalorder %s88_s26, %s158_s4 }
  0x99   :  { %p94_p7 = pnand %p92_p6, %p89_p5 }
  0x9b   :  { %97 = shalt.err (!%p94_p7)
}
  0x9c   :  { %67 = dma.vmem_to_hbm [thread:$0]  %s65_s3, 256, %s158_s4, [#allocation3]  }
  0x9d   :  { %98 = dma.done.wait [#allocation3], 256  }
  0x9e   :  { %99 = vsyncadd [#allocation3], 4294967040 }
  0x9f   :  { %71 = vsyncpa [#allocation3], 1 }

</bundles_post_ra>
